<compile_context>
chip_gen: v6e
topology: v6e:2x2x1
jax: 0.10.0
libtpu: 0.0.40
codegen_flags: <defaults>
</compile_context>

<pallas_src>
import functools

import jax
import jax.numpy as jnp
from jax.experimental import pallas as pl
from jax.experimental.pallas import tpu as pltpu

_LANE = 128   # lane width / feature padding granularity
_TB = 128     # batch rows per grid step


def _round_up(n, m):
    return (n + m - 1) // m * m


def _mlp_kernel(x_ref, w1_ref, b1_ref, w2_ref, b2_ref, w3_ref, b3_ref, o_ref):
    # Layer 1: bf16 MXU matmul, f32 accumulate, bias + ReLU in f32.
    h1 = jnp.dot(x_ref[...], w1_ref[...], preferred_element_type=jnp.float32)
    h1 = jnp.maximum(h1 + b1_ref[...], 0.0).astype(jnp.bfloat16)
    # Layer 2
    h2 = jnp.dot(h1, w2_ref[...], preferred_element_type=jnp.float32)
    h2 = jnp.maximum(h2 + b2_ref[...], 0.0).astype(jnp.bfloat16)
    # Layer 3 (no activation)
    out = jnp.dot(h2, w3_ref[...], preferred_element_type=jnp.float32)
    o_ref[...] = (out + b3_ref[...]).astype(o_ref.dtype)


def _pad2d(a, rows, cols):
    return jnp.pad(a, ((0, rows - a.shape[0]), (0, cols - a.shape[1])))


def prepare_params(params):
    """Pad feature dims to 128-lane multiples; weights -> bf16, biases -> f32.

    Zero padding is semantics-preserving: padded input columns multiply zero
    weight rows, padded hidden units have zero weight/bias (relu(0)=0), and
    padded action columns are sliced off by the wrapper.
    """
    w1, b1, w2, b2, w3, b3 = (params[k] for k in ("w1", "b1", "w2", "b2", "w3", "b3"))
    obs_p = _round_up(w1.shape[0], _LANE)
    hid_p = _round_up(w1.shape[1], _LANE)
    act_p = _round_up(w3.shape[1], _LANE)
    return {
        "w1": _pad2d(w1, obs_p, hid_p).astype(jnp.bfloat16),
        "b1": _pad2d(b1, 1, hid_p).astype(jnp.float32),
        "w2": _pad2d(w2, hid_p, hid_p).astype(jnp.bfloat16),
        "b2": _pad2d(b2, 1, hid_p).astype(jnp.float32),
        "w3": _pad2d(w3, hid_p, act_p).astype(jnp.bfloat16),
        "b3": _pad2d(b3, 1, act_p).astype(jnp.float32),
    }


@functools.partial(jax.jit, static_argnames=("n_actions",))
def cartpole_forward(x, p, n_actions):
    """x: [B, n_obs] float32. p: prepared (padded/bf16) params. Returns [B, n_actions] f32."""
    B, n_obs = x.shape
    obs_p, hid_p = p["w1"].shape
    act_p = p["w3"].shape[1]
    Bp = _round_up(max(B, 1), _TB)

    # Pad batch to a multiple of the 128-row tile and features to the padded
    # lane width; cast to bf16 for the MXU.
    x_p = jnp.pad(x.astype(jnp.bfloat16), ((0, Bp - B), (0, obs_p - n_obs)))

    grid = (Bp // _TB,)

    def const_spec(a):  # weights/biases: VMEM-resident across all grid steps
        return pl.BlockSpec(a.shape, lambda i: (0, 0))

    flops = 2 * Bp * (obs_p * hid_p + hid_p * hid_p + hid_p * act_p)
    bytes_accessed = (
        x_p.size * x_p.dtype.itemsize
        + sum(p[k].size * p[k].dtype.itemsize for k in ("w1", "b1", "w2", "b2", "w3", "b3"))
        + Bp * act_p * 4
    )

    out = pl.pallas_call(
        _mlp_kernel,
        out_shape=jax.ShapeDtypeStruct((Bp, act_p), jnp.float32),
        grid=grid,
        in_specs=[
            pl.BlockSpec((_TB, obs_p), lambda i: (i, 0)),   # x: tiled over batch
            const_spec(p["w1"]), const_spec(p["b1"]),
            const_spec(p["w2"]), const_spec(p["b2"]),
            const_spec(p["w3"]), const_spec(p["b3"]),
        ],
        out_specs=pl.BlockSpec((_TB, act_p), lambda i: (i, 0)),
        compiler_params=pltpu.CompilerParams(
            dimension_semantics=("parallel",),  # megacore sharding on v7x
        ),
        cost_estimate=pl.CostEstimate(
            flops=flops, transcendentals=0, bytes_accessed=bytes_accessed),
    )(x_p, p["w1"], p["b1"], p["w2"], p["b2"], p["w3"], p["b3"])

    return out[:B, :n_actions]


def init_params(key, n_observations, n_actions, n_nodes):
    """Deterministic init mimicking nn.Linear's U(-1/sqrt(fan_in), 1/sqrt(fan_in))."""
    ks = jax.random.split(key, 6)

    def linear(kw, kb, fan_in, fan_out):
        bound = 1.0 / jnp.sqrt(jnp.float32(fan_in))
        w = jax.random.uniform(kw, (fan_in, fan_out), jnp.float32, -bound, bound)
        b = jax.random.uniform(kb, (1, fan_out), jnp.float32, -bound, bound)
        return w, b

    w1, b1 = linear(ks[0], ks[1], n_observations, n_nodes)
    w2, b2 = linear(ks[2], ks[3], n_nodes, n_nodes)
    w3, b3 = linear(ks[4], ks[5], n_nodes, n_actions)
    return {"w1": w1, "b1": b1, "w2": w2, "b2": b2, "w3": w3, "b3": b3}


def reference_forward(x, p):
    h1 = jax.nn.relu(x @ p["w1"] + p["b1"])
    h2 = jax.nn.relu(h1 @ p["w2"] + p["b2"])
    return h2 @ p["w3"] + p["b3"]


if __name__ == "__main__":
    # CartPole: 4 observations, 2 actions, 32 hidden nodes.
    # B=200 is NOT a multiple of the 128-row tile: exercises batch pad + slice
    # and a 2-step grid (so the "parallel" axis is non-trivial).
    n_observations, n_actions, n_nodes = 4, 2, 32
    B = 200

    key = jax.random.PRNGKey(0)
    k_x, k_p = jax.random.split(key)
    x = jax.random.normal(k_x, (B, n_observations), jnp.float32)
    params = init_params(k_p, n_observations, n_actions, n_nodes)
    padded_params = prepare_params(params)

    out = cartpole_forward(x, padded_params, n_actions=n_actions)
    out = jax.block_until_ready(out)

    ref = reference_forward(x, params)
    assert out.shape == (B, n_actions), out.shape
    # bf16 MXU inputs (f32 accumulation) -> tolerance set for bf16-class error.
    assert jnp.allclose(out, ref, atol=2e-2, rtol=2e-2), float(jnp.max(jnp.abs(out - ref)))

    print("KERNEL_OK")
</pallas_src>

<mosaic_0001>
module attributes {stable_mosaic.version = 11 : i64} {
  func.func @_mlp_kernel(%arg0: i32, %arg1: memref<128x128xbf16, #tpu.memory_space<vmem>>, %arg2: memref<128x128xbf16, #tpu.memory_space<vmem>>, %arg3: memref<1x128xf32, #tpu.memory_space<vmem>>, %arg4: memref<128x128xbf16, #tpu.memory_space<vmem>>, %arg5: memref<1x128xf32, #tpu.memory_space<vmem>>, %arg6: memref<128x128xbf16, #tpu.memory_space<vmem>>, %arg7: memref<1x128xf32, #tpu.memory_space<vmem>>, %arg8: memref<128x128xf32, #tpu.memory_space<vmem>>) attributes {dimension_semantics = [#tpu.dimension_semantics<parallel>], iteration_bounds = array<i64: 2>, scalar_prefetch = 0 : i64, scratch_operands = 0 : i64, tpu.core_type = #tpu.core_type<tc>, window_params = [{transform_indices = @transform_0, window_bounds = array<i64: 128, 128>}, {pipeline_mode = #tpu.pipeline_mode<synchronous>, transform_indices = @transform_1, window_bounds = array<i64: 128, 128>}, {pipeline_mode = #tpu.pipeline_mode<synchronous>, transform_indices = @transform_2, window_bounds = array<i64: 1, 128>}, {pipeline_mode = #tpu.pipeline_mode<synchronous>, transform_indices = @transform_3, window_bounds = array<i64: 128, 128>}, {pipeline_mode = #tpu.pipeline_mode<synchronous>, transform_indices = @transform_4, window_bounds = array<i64: 1, 128>}, {pipeline_mode = #tpu.pipeline_mode<synchronous>, transform_indices = @transform_5, window_bounds = array<i64: 128, 128>}, {pipeline_mode = #tpu.pipeline_mode<synchronous>, transform_indices = @transform_6, window_bounds = array<i64: 1, 128>}, {transform_indices = @transform_7, window_bounds = array<i64: 128, 128>}]} {
    %c0 = arith.constant 0 : index
    %c0_0 = arith.constant 0 : index
    %0 = vector.load %arg1[%c0, %c0_0] : memref<128x128xbf16, #tpu.memory_space<vmem>>, vector<128x128xbf16>
    %c0_1 = arith.constant 0 : index
    %c0_2 = arith.constant 0 : index
    %1 = vector.load %arg2[%c0_1, %c0_2] : memref<128x128xbf16, #tpu.memory_space<vmem>>, vector<128x128xbf16>
    %cst = arith.constant dense<0.000000e+00> : vector<128x128xf32>
    %2 = tpu.matmul %0, %1, %cst {dimension_numbers = #tpu.dot_dimension_numbers<[1], [0], [0], [1], [0, 0, 1, 1], [], []>} : vector<128x128xbf16>, vector<128x128xbf16>, vector<128x128xf32> -> vector<128x128xf32>
    %c0_3 = arith.constant 0 : index
    %c0_4 = arith.constant 0 : index
    %3 = vector.load %arg3[%c0_3, %c0_4] : memref<1x128xf32, #tpu.memory_space<vmem>>, vector<1x128xf32>
    %4 = vector.broadcast %3 : vector<1x128xf32> to vector<128x128xf32>
    %5 = arith.addf %2, %4 : vector<128x128xf32>
    %cst_5 = arith.constant 0.000000e+00 : f32
    %6 = vector.broadcast %cst_5 : f32 to vector<128x128xf32>
    %7 = arith.maximumf %5, %6 : vector<128x128xf32>
    %8 = arith.truncf %7 : vector<128x128xf32> to vector<128x128xbf16>
    %c0_6 = arith.constant 0 : index
    %c0_7 = arith.constant 0 : index
    %9 = vector.load %arg4[%c0_6, %c0_7] : memref<128x128xbf16, #tpu.memory_space<vmem>>, vector<128x128xbf16>
    %cst_8 = arith.constant dense<0.000000e+00> : vector<128x128xf32>
    %10 = tpu.matmul %8, %9, %cst_8 {dimension_numbers = #tpu.dot_dimension_numbers<[1], [0], [0], [1], [0, 0, 1, 1], [], []>} : vector<128x128xbf16>, vector<128x128xbf16>, vector<128x128xf32> -> vector<128x128xf32>
    %c0_9 = arith.constant 0 : index
    %c0_10 = arith.constant 0 : index
    %11 = vector.load %arg5[%c0_9, %c0_10] : memref<1x128xf32, #tpu.memory_space<vmem>>, vector<1x128xf32>
    %12 = vector.broadcast %11 : vector<1x128xf32> to vector<128x128xf32>
    %13 = arith.addf %10, %12 : vector<128x128xf32>
    %cst_11 = arith.constant 0.000000e+00 : f32
    %14 = vector.broadcast %cst_11 : f32 to vector<128x128xf32>
    %15 = arith.maximumf %13, %14 : vector<128x128xf32>
    %16 = arith.truncf %15 : vector<128x128xf32> to vector<128x128xbf16>
    %c0_12 = arith.constant 0 : index
    %c0_13 = arith.constant 0 : index
    %17 = vector.load %arg6[%c0_12, %c0_13] : memref<128x128xbf16, #tpu.memory_space<vmem>>, vector<128x128xbf16>
    %cst_14 = arith.constant dense<0.000000e+00> : vector<128x128xf32>
    %18 = tpu.matmul %16, %17, %cst_14 {dimension_numbers = #tpu.dot_dimension_numbers<[1], [0], [0], [1], [0, 0, 1, 1], [], []>} : vector<128x128xbf16>, vector<128x128xbf16>, vector<128x128xf32> -> vector<128x128xf32>
    %c0_15 = arith.constant 0 : index
    %c0_16 = arith.constant 0 : index
    %19 = vector.load %arg7[%c0_15, %c0_16] : memref<1x128xf32, #tpu.memory_space<vmem>>, vector<1x128xf32>
    %20 = vector.broadcast %19 : vector<1x128xf32> to vector<128x128xf32>
    %21 = arith.addf %18, %20 : vector<128x128xf32>
    %c0_17 = arith.constant 0 : index
    %c0_18 = arith.constant 0 : index
    %22 = vector.load %arg8[%c0_17, %c0_18] : memref<128x128xf32, #tpu.memory_space<vmem>>, vector<128x128xf32>
    tpu.vector_store %arg8[%c0_17, %c0_18], %21 {strides = array<i32>} : memref<128x128xf32, #tpu.memory_space<vmem>>, vector<128x128xf32>,
    return
  }
  func.func @transform_0(%arg0: i32) -> (i32, i32) {
    %c0_i32 = arith.constant 0 : i32
    %c0_i32_0 = arith.constant 0 : i32
    return %arg0, %c0_i32 : i32, i32
  }
  func.func @transform_1(%arg0: i32) -> (i32, i32) {
    %c0_i32 = arith.constant 0 : i32
    %c0_i32_0 = arith.constant 0 : i32
    %c0_i32_1 = arith.constant 0 : i32
    return %c0_i32, %c0_i32_0 : i32, i32
  }
  func.func @transform_2(%arg0: i32) -> (i32, i32) {
    %c0_i32 = arith.constant 0 : i32
    %c0_i32_0 = arith.constant 0 : i32
    %c0_i32_1 = arith.constant 0 : i32
    return %c0_i32, %c0_i32_0 : i32, i32
  }
  func.func @transform_3(%arg0: i32) -> (i32, i32) {
    %c0_i32 = arith.constant 0 : i32
    %c0_i32_0 = arith.constant 0 : i32
    %c0_i32_1 = arith.constant 0 : i32
    return %c0_i32, %c0_i32_0 : i32, i32
  }
  func.func @transform_4(%arg0: i32) -> (i32, i32) {
    %c0_i32 = arith.constant 0 : i32
    %c0_i32_0 = arith.constant 0 : i32
    %c0_i32_1 = arith.constant 0 : i32
    return %c0_i32, %c0_i32_0 : i32, i32
  }
  func.func @transform_5(%arg0: i32) -> (i32, i32) {
    %c0_i32 = arith.constant 0 : i32
    %c0_i32_0 = arith.constant 0 : i32
    %c0_i32_1 = arith.constant 0 : i32
    return %c0_i32, %c0_i32_0 : i32, i32
  }
  func.func @transform_6(%arg0: i32) -> (i32, i32) {
    %c0_i32 = arith.constant 0 : i32
    %c0_i32_0 = arith.constant 0 : i32
    %c0_i32_1 = arith.constant 0 : i32
    return %c0_i32, %c0_i32_0 : i32, i32
  }
  func.func @transform_7(%arg0: i32) -> (i32, i32) {
    %c0_i32 = arith.constant 0 : i32
    %c0_i32_0 = arith.constant 0 : i32
    return %arg0, %c0_i32 : i32, i32
  }
}

</mosaic_0001>

<bundles_post_ra>
// kernel: cartpole_forward.1
= control target key start
LH: loop header
LB: loop body
LE: loop exit
PB: predicated region body
PF: predicated region fallthrough
CT: control target
= control target key end

     0   :  { %s1265_s24 = smov 0   ;;  %s1401_s0 = inlined_call_operand.vmem [shape: bf16[256,128], index: 0, kind: input, shape index: {}]   ;;  %s1402_s1 = inlined_call_operand.vmem [shape: bf16[128,128], index: 1, kind: input, shape index: {}]   ;;  %s1403_s2 = inlined_call_operand.vmem [shape: f32[1,128], index: 2, kind: input, shape index: {}]   ;;  %s1404_s3 = inlined_call_operand.vmem [shape: bf16[128,128], index: 3, kind: input, shape index: {}]   ;;  %s1405_s4 = inlined_call_operand.vmem [shape: f32[1,128], index: 4, kind: input, shape index: {}]   ;;  %s1406_s5 = inlined_call_operand.vmem [shape: bf16[128,128], index: 5, kind: input, shape index: {}]   ;;  %s1407_s6 = inlined_call_operand.vmem [shape: f32[1,128], index: 6, kind: input, shape index: {}]   ;;  %s1408_s7 = inlined_call_operand.vmem [shape: f32[256,128], index: 7, kind: output, shape index: {}]  }
   0x1 LB: > { %s971_s25 = sadd.s32 4294967295, %s1223_s24   ;;  %p975_p0 = scmp.ge.s32.totalorder %s1223_s24, 1  ;;  %s1223_s24 = sphi %s1265_s24, %s17_s24  }
   0x2   : > { %p238_p1 = scmp.lt.s32.totalorder %s1223_s24, 3 }
   0x4   : > { %p239_p2 = pnand %p975_p0, %p238_p1 }
   0x5   : > { %s976_s28 = sshll.u32 (!%p239_p2), %s971_s25, 4 }
   0x6   : > { %242 = sbr.rel (%p239_p2) target bundleno = 682 (0x2aa), region = 48  ;;  %p271_p3 = scmp.lt.s32.totalorder (!%p239_p2), %s976_s28, 31 }
   0xb   : > { %v1185_v0 = vld [vmem:[%s1402_s1 + $0x38] sm:$0xff]   ;;  %v1186_v1 = vld [vmem:[%s1402_s1 + $0x30] sm:$0xff]   ;;  %s1410_s28 = smov (!%p271_p3, %s976_s28), 31  ;;  %v1187_v2 = vld [vmem:[%s1402_s1 + $0x28] sm:$0xff]  }
   0xc   : > { %1065 = vmatprep.subr.bf16.mxu0 %v1185_v0  ;;  %s977_s10 = sshll.u32 %s1410_s28, 2  ;;  %v1188_v3 = vld [vmem:[%s1402_s1 + $0x20] sm:$0xff]   ;;  %v1189_v5 = vld [vmem:[%s1402_s1 + $0x18] sm:$0xff]   ;;  %v1190_v6 = vld [vmem:[%s1402_s1 + $0x10] sm:$0xff]   ;;  %s979_s19 = sshll.u32 %s1410_s28, 3 }
   0xd   : > { %1066 = vmatpush3.bf16.msra.mxu0 %v1185_v0  ;;  %s1288_s13 = scalar_lea.vmem %s1401_s0, %s977_s10  ;;  %v1201_v7 = vld [vmem:[%s1404_s3 + $0x38] sm:$0xff]   ;;  %v1202_v8 = vld [vmem:[%s1404_s3 + $0x30] sm:$0xff]   ;;  %v1191_v9 = vld [vmem:[%s1402_s1 + $0x8] sm:$0xff]   ;;  %s1380_s23 = scalar_lea.vmem %s1408_s7, %s979_s19 }
   0xe   : > { %1067 = vmatprep.subr.bf16.mxu0 %v1186_v1  ;;  %v1193_v4 = vld [vmem:[%s1288_s13] sm:$0xff]   ;;  %1097 = vmatprep.subr.bf16.mxu1 %v1201_v7  ;;  %v1203_v10 = vld [vmem:[%s1404_s3 + $0x28] sm:$0xff]   ;;  %v1205_v13 = vld [vmem:[%s1404_s3 + $0x18] sm:$0xff]  }
   0xf   : > { %1081 = vmatprep.mubr.bf16.mxu0 %v1193_v4  ;;  %1098 = vmatpush3.bf16.msra.mxu1 %v1201_v7  ;;  %v1192_v11 = vld [vmem:[%s1402_s1] sm:$0xff]   ;;  %v1194_v14 = vld [vmem:[%s1288_s13 + $0x8] sm:$0xff]   ;;  %v1195_v15 = vld [vmem:[%s1288_s13 + $0x10] sm:$0xff]  }
  0x10   : > { %1099 = vmatprep.subr.bf16.mxu1 %v1202_v8  ;;  %v1204_v12 = vld [vmem:[%s1404_s3 + $0x20] sm:$0xff]   ;;  %v1196_v16 = vld [vmem:[%s1288_s13 + $0x18] sm:$0xff]   ;;  %v1198_v18 = vld [vmem:[%s1288_s13 + $0x28] sm:$0xff]  }
  0x11   : > { %1068 = vmatpush3.bf16.msra.mxu0 %v1186_v1  ;;  %v1197_v17 = vld [vmem:[%s1288_s13 + $0x20] sm:$0xff]   ;;  %v1199_v19 = vld [vmem:[%s1288_s13 + $0x30] sm:$0xff]   ;;  %v1200_v20 = vld [vmem:[%s1288_s13 + $0x38] sm:$0xff]  }
  0x12   : > { %1069 = vmatprep.subr.bf16.mxu0 %v1187_v2  ;;  %v1206_v21 = vld [vmem:[%s1404_s3 + $0x10] sm:$0xff]   ;;  %v1207_v22 = vld [vmem:[%s1404_s3 + $0x8] sm:$0xff]   ;;  %v1208_v23 = vld [vmem:[%s1404_s3] sm:$0xff]  }
  0x13   : > { %1100 = vmatpush3.bf16.msra.mxu1 %v1202_v8  ;;  %v1209_v24 = vld [vmem:[%s1406_s5 + $0x38] sm:$0xff]   ;;  %v1210_v25 = vld [vmem:[%s1406_s5 + $0x30] sm:$0xff]   ;;  %v1211_v26 = vld [vmem:[%s1406_s5 + $0x28] sm:$0xff]  }
  0x14   : > { %1101 = vmatprep.subr.bf16.mxu1 %v1203_v10  ;;  %v1212_v27 = vld [vmem:[%s1406_s5 + $0x20] sm:$0xff]   ;;  %v1352_v28 = vld [vmem:[%s1406_s5 + $0x18] sm:$0xff]  }
  0x15   : > { %1070 = vmatpush3.bf16.msra.mxu0 %v1187_v2  ;;  %v980_v31 = vld [vmem:[%s1403_s2] ss:$0 sm:$0xff] }
  0x16   : > { %1071 = vmatprep.subr.bf16.mxu0 %v1188_v3 }
  0x17   : > { %1102 = vmatpush3.bf16.msra.mxu1 %v1203_v10 }
  0x18   : > { %1103 = vmatprep.subr.bf16.mxu1 %v1204_v12 }
  0x19   : > { %1072 = vmatpush3.bf16.msra.mxu0 %v1188_v3 }
  0x1a   : > { %1073 = vmatprep.subr.bf16.mxu0 %v1189_v5 }
  0x1b   : > { %1104 = vmatpush3.bf16.msra.mxu1 %v1204_v12 }
  0x1c   : > { %1105 = vmatprep.subr.bf16.mxu1 %v1205_v13 }
  0x1d   : > { %1074 = vmatpush3.bf16.msra.mxu0 %v1189_v5 }
  0x1e   : > { %1075 = vmatprep.subr.bf16.mxu0 %v1190_v6 }
  0x1f   : > { %1106 = vmatpush3.bf16.msra.mxu1 %v1205_v13 }
  0x20   : > { %1107 = vmatprep.subr.bf16.mxu1 %v1206_v21 }
  0x21   : > { %1076 = vmatpush3.bf16.msra.mxu0 %v1190_v6 }
  0x22   : > { %1077 = vmatprep.subr.bf16.mxu0 %v1191_v9 }
  0x23   : > { %1108 = vmatpush3.bf16.msra.mxu1 %v1206_v21 }
  0x24   : > { %1109 = vmatprep.subr.bf16.mxu1 %v1207_v22 }
  0x25   : > { %1078 = vmatpush3.bf16.msra.mxu0 %v1191_v9 }
  0x26   : > { %1079 = vmatprep.subr.bf16.mxu0 %v1192_v11 }
  0x27   : > { %1110 = vmatpush3.bf16.msra.mxu1 %v1207_v22  ;;  %v1214_v22 = vld [vmem:[%s1406_s5 + $0x10] sm:$0xff]  }
  0x28   : > { %1111 = vmatprep.subr.bf16.mxu1 %v1208_v23 }
  0x29   : > { %1080 = vmatpush3.bf16.msra.mxu0 %v1192_v11 }
  0x2a   : > { %1129 = vmatprep.subr.bf16.mxu0 %v1209_v24 }
  0x2b   : > { %1112 = vmatpush3.bf16.msra.mxu1 %v1208_v23  ;;  %v1215_v23 = vld [vmem:[%s1406_s5 + $0x8] sm:$0xff]  }
  0x2c   : > { %1082 = vmatmul.mubr.bf16.vlgmr.msra.gmra.mxu0 %v1194_v14  ;;  %1161 = vmatprep.subr.bf16.mxu1 %v1209_v24 }
  0x2d   : > { %1085 = vmatprep.mubr.bf16.mxu0 %v1195_v15  ;;  %1130 = vmatpush3.bf16.msra.mxu0 %v1209_v24 }
  0x2e   : > { %1131 = vmatprep.subr.bf16.mxu0 %v1210_v25 }
  0x31   : > { %1132 = vmatpush3.bf16.msra.mxu0 %v1210_v25 }
  0x32   : > { %1133 = vmatprep.subr.bf16.mxu0 %v1211_v26 }
  0x34   : > { %1086 = vmatmul.mubr.bf16.gmra.mxu0 %v1196_v16 }
  0x35   : > { %1089 = vmatprep.mubr.bf16.mxu0 %v1197_v17  ;;  %1134 = vmatpush3.bf16.msra.mxu0 %v1211_v26 }
  0x36   : > { %1135 = vmatprep.subr.bf16.mxu0 %v1212_v27 }
  0x39   : > { %1136 = vmatpush3.bf16.msra.mxu0 %v1212_v27 }
  0x3a   : > { %1137 = vmatprep.subr.bf16.mxu0 %v1352_v28 }
  0x3c   : > { %1090 = vmatmul.mubr.bf16.gmra.mxu0 %v1198_v18 }
  0x3d   : > { %1093 = vmatprep.mubr.bf16.mxu0 %v1199_v19  ;;  %1138 = vmatpush3.bf16.msra.mxu0 %v1352_v28 }
  0x3e   : > { %1139 = vmatprep.subr.bf16.mxu0 %v1214_v22 }
  0x41   : > { %1140 = vmatpush3.bf16.msra.mxu0 %v1214_v22 }
  0x42   : > { %1141 = vmatprep.subr.bf16.mxu0 %v1215_v23 }
  0x44   : > { %1094 = vmatmul.mubr.bf16.gmra.mxu0 %v1200_v20 }
  0x45   : > { %1142 = vmatpush3.bf16.msra.mxu0 %v1215_v23 }
  0xec   : > { %v1083_v29 = vpop.f32.mrf.mxu0 }
  0xed   : > { %v461_v35 = vadd.f32 %v1083_v29, %v980_v31 }
  0xee   : > { %v452_v30 = vpop.f32.mrf.mxu0 }
  0xef   : > { %v453_v33 = vadd.f32 %v980_v31, %v452_v30  ;;  %v517_v42 = vmax.f32 %v461_v35, 0.0 }
  0xf0   : > { %v1084_v32 = vpop.f32.mrf.mxu0 }
  0xf1   : > { %v464_v34 = vadd.f32 %v1084_v32, %v980_v31  ;;  %v515_v40 = vmax.f32 %v453_v33, 0.0 }
  0xf2   : > { %v455_v36 = vpop.f32.mrf.mxu0 }
  0xf3   : > { %v456_v37 = vadd.f32 %v980_v31, %v455_v36  ;;  %v518_v38 = vmax.f32 %v464_v34, 0.0 }
  0xf4   : > { %v1087_v39 = vpop.f32.mrf.mxu0 }
  0xf5   : > { %v516_v41 = vmax.f32 %v456_v37, 0.0  ;;  %v532_v45 = vpack.c.bf16 %v518_v38, %v517_v42  ;;  %v477_v49 = vadd.f32 %v1087_v39, %v980_v31 }
  0xf6   : > { %v468_v43 = vpop.f32.mrf.mxu0 }
  0xf7   : > { %v531_v44 = vpack.c.bf16 %v516_v41, %v515_v40  ;;  %v469_v47 = vadd.f32 %v980_v31, %v468_v43  ;;  %v521_v56 = vmax.f32 %v477_v49, 0.0 }
  0xf8   : > { %v1088_v46 = vpop.f32.mrf.mxu0 }
  0xf9   : > { %v480_v48 = vadd.f32 %v1088_v46, %v980_v31  ;;  %1113 = vmatprep.mubr.bf16.mxu1 %v531_v44  ;;  %v519_v54 = vmax.f32 %v469_v47, 0.0 }
  0xfa   : > { %v471_v50 = vpop.f32.mrf.mxu0  ;;  %1114 = vmatmul.mubr.bf16.vlgmr.msra.gmra.mxu1 %v532_v45 }
  0xfb   : > { %v472_v51 = vadd.f32 %v980_v31, %v471_v50  ;;  %1169 = vmatpush3.bf16.msra.mxu1 %v1209_v24  ;;  %v522_v52 = vmax.f32 %v480_v48, 0.0  ;;  %v1216_v24 = vld [vmem:[%s1406_s5] sm:$0xff]  }
  0xfc   : > { %v1091_v53 = vpop.f32.mrf.mxu0  ;;  %1162 = vmatprep.subr.bf16.mxu1 %v1210_v25  ;;  %1143 = vmatprep.subr.bf16.mxu0 %v1216_v24 }
  0xfd   : > { %v520_v55 = vmax.f32 %v472_v51, 0.0  ;;  %v534_v59 = vpack.c.bf16 %v522_v52, %v521_v56  ;;  %v493_v63 = vadd.f32 %v1091_v53, %v980_v31  ;;  %1144 = vmatpush3.bf16.msra.mxu0 %v1216_v24 }
  0xfe   : > { %v484_v57 = vpop.f32.mrf.mxu0 }
  0xff   : > { %v533_v58 = vpack.c.bf16 %v520_v55, %v519_v54  ;;  %1170 = vmatpush3.bf16.msra.mxu1 %v1210_v25  ;;  %v485_v61 = vadd.f32 %v980_v31, %v484_v57  ;;  %v525_v6 = vmax.f32 %v493_v63, 0.0 }
 0x100   : > { %v1092_v60 = vpop.f32.mrf.mxu0  ;;  %1163 = vmatprep.subr.bf16.mxu1 %v1211_v26 }
 0x101   : > { %v496_v62 = vadd.f32 %v1092_v60, %v980_v31  ;;  %1117 = vmatprep.mubr.bf16.mxu1 %v533_v58  ;;  %v523_v4 = vmax.f32 %v485_v61, 0.0 }
 0x102   : > { %v487_v0 = vpop.f32.mrf.mxu0  ;;  %1118 = vmatmul.mubr.bf16.gmra.mxu1 %v534_v59 }
 0x103   : > { %v488_v1 = vadd.f32 %v980_v31, %v487_v0  ;;  %1171 = vmatpush3.bf16.msra.mxu1 %v1211_v26  ;;  %v526_v2 = vmax.f32 %v496_v62, 0.0 }
 0x104   : > { %v1095_v3 = vpop.f32.mrf.mxu0  ;;  %1164 = vmatprep.subr.bf16.mxu1 %v1212_v27 }
 0x105   : > { %v524_v5 = vmax.f32 %v488_v1, 0.0  ;;  %v536_v9 = vpack.c.bf16 %v526_v2, %v525_v6  ;;  %v509_v13 = vadd.f32 %v1095_v3, %v980_v31 }
 0x106   : > { %v500_v7 = vpop.f32.mrf.mxu0 }
 0x107   : > { %v535_v8 = vpack.c.bf16 %v524_v5, %v523_v4  ;;  %1172 = vmatpush3.bf16.msra.mxu1 %v1212_v27  ;;  %v501_v11 = vadd.f32 %v980_v31, %v500_v7  ;;  %v529_v19 = vmax.f32 %v509_v13, 0.0  ;;  %v997_v27 = vld [vmem:[%s1405_s4] ss:$0 sm:$0xff] }
 0x108   : > { %v1096_v10 = vpop.f32.mrf.mxu0  ;;  %1165 = vmatprep.subr.bf16.mxu1 %v1352_v28 }
 0x109   : > { %v512_v12 = vadd.f32 %v1096_v10, %v980_v31  ;;  %1121 = vmatprep.mubr.bf16.mxu1 %v535_v8  ;;  %v527_v17 = vmax.f32 %v501_v11, 0.0 }
 0x10a   : > { %v503_v14 = vpop.f32.mrf.mxu0  ;;  %1122 = vmatmul.mubr.bf16.gmra.mxu1 %v536_v9 }
 0x10b   : > { %v504_v15 = vadd.f32 %v980_v31, %v503_v14  ;;  %1173 = vmatpush3.bf16.msra.mxu1 %v1352_v28  ;;  %v530_v16 = vmax.f32 %v512_v12, 0.0 }
 0x10c   : > { %1166 = vmatprep.subr.bf16.mxu1 %v1214_v22 }
 0x10d   : > { %v528_v18 = vmax.f32 %v504_v15, 0.0  ;;  %v538_v21 = vpack.c.bf16 %v530_v16, %v529_v19 }
 0x10f   : > { %v537_v20 = vpack.c.bf16 %v528_v18, %v527_v17  ;;  %1174 = vmatpush3.bf16.msra.mxu1 %v1214_v22  ;;  %v1006_v18 = vld [vmem:[%s1407_s6] ss:$0 sm:$0xff] }
 0x110   : > { %1167 = vmatprep.subr.bf16.mxu1 %v1215_v23 }
 0x111   : > { %1125 = vmatprep.mubr.bf16.mxu1 %v537_v20 }
 0x112   : > { %1126 = vmatmul.mubr.bf16.gmra.mxu1 %v538_v21 }
 0x113   : > { %1175 = vmatpush3.bf16.msra.mxu1 %v1215_v23 }
 0x114   : > { %1168 = vmatprep.subr.bf16.mxu1 %v1216_v24 }
 0x117   : > { %1176 = vmatpush3.bf16.msra.mxu1 %v1216_v24 }
 0x1ba   : > { %v1115_v25 = vpop.f32.mrf.mxu1 }
 0x1bb   : > { %v653_v31 = vadd.f32 %v1115_v25, %v997_v27 }
 0x1bc   : > { %v644_v26 = vpop.f32.mrf.mxu1 }
 0x1bd   : > { %v645_v29 = vadd.f32 %v997_v27, %v644_v26  ;;  %v709_v38 = vmax.f32 %v653_v31, 0.0 }
 0x1be   : > { %v1116_v28 = vpop.f32.mrf.mxu1 }
 0x1bf   : > { %v656_v30 = vadd.f32 %v1116_v28, %v997_v27  ;;  %v707_v36 = vmax.f32 %v645_v29, 0.0 }
 0x1c0   : > { %v647_v32 = vpop.f32.mrf.mxu1 }
 0x1c1   : > { %v648_v33 = vadd.f32 %v997_v27, %v647_v32  ;;  %v710_v34 = vmax.f32 %v656_v30, 0.0 }
 0x1c2   : > { %v1119_v35 = vpop.f32.mrf.mxu1 }
 0x1c3   : > { %v708_v37 = vmax.f32 %v648_v33, 0.0  ;;  %v724_v41 = vpack.c.bf16 %v710_v34, %v709_v38  ;;  %v669_v45 = vadd.f32 %v1119_v35, %v997_v27 }
 0x1c4   : > { %v660_v39 = vpop.f32.mrf.mxu1 }
 0x1c5   : > { %v723_v40 = vpack.c.bf16 %v708_v37, %v707_v36  ;;  %v661_v43 = vadd.f32 %v997_v27, %v660_v39  ;;  %v713_v52 = vmax.f32 %v669_v45, 0.0 }
 0x1c6   : > { %v1120_v42 = vpop.f32.mrf.mxu1 }
 0x1c7   : > { %v672_v44 = vadd.f32 %v1120_v42, %v997_v27  ;;  %1145 = vmatprep.mubr.bf16.mxu0 %v723_v40  ;;  %v711_v50 = vmax.f32 %v661_v43, 0.0 }
 0x1c8   : > { %v663_v46 = vpop.f32.mrf.mxu1  ;;  %1146 = vmatmul.mubr.bf16.vlgmr.msra.gmra.mxu0 %v724_v41 }
 0x1c9   : > { %v664_v47 = vadd.f32 %v997_v27, %v663_v46  ;;  %v714_v48 = vmax.f32 %v672_v44, 0.0 }
 0x1ca   : > { %v1123_v49 = vpop.f32.mrf.mxu1 }
 0x1cb   : > { %v712_v51 = vmax.f32 %v664_v47, 0.0  ;;  %v726_v55 = vpack.c.bf16 %v714_v48, %v713_v52  ;;  %v685_v59 = vadd.f32 %v1123_v49, %v997_v27 }
 0x1cc   : > { %v676_v53 = vpop.f32.mrf.mxu1 }
 0x1cd   : > { %v725_v54 = vpack.c.bf16 %v712_v51, %v711_v50  ;;  %v677_v57 = vadd.f32 %v997_v27, %v676_v53  ;;  %v717_v2 = vmax.f32 %v685_v59, 0.0 }
 0x1ce   : > { %v1124_v56 = vpop.f32.mrf.mxu1 }
 0x1cf   : > { %v688_v58 = vadd.f32 %v1124_v56, %v997_v27  ;;  %1149 = vmatprep.mubr.bf16.mxu0 %v725_v54  ;;  %v715_v0 = vmax.f32 %v677_v57, 0.0 }
 0x1d0   : > { %v679_v60 = vpop.f32.mrf.mxu1  ;;  %1150 = vmatmul.mubr.bf16.gmra.mxu0 %v726_v55 }
 0x1d1   : > { %v680_v61 = vadd.f32 %v997_v27, %v679_v60  ;;  %v718_v62 = vmax.f32 %v688_v58, 0.0 }
 0x1d2   : > { %v1127_v63 = vpop.f32.mrf.mxu1 }
 0x1d3   : > { %v716_v1 = vmax.f32 %v680_v61, 0.0  ;;  %v728_v5 = vpack.c.bf16 %v718_v62, %v717_v2  ;;  %v701_v9 = vadd.f32 %v1127_v63, %v997_v27 }
 0x1d4   : > { %v692_v3 = vpop.f32.mrf.mxu1 }
 0x1d5   : > { %v727_v4 = vpack.c.bf16 %v716_v1, %v715_v0  ;;  %v693_v7 = vadd.f32 %v997_v27, %v692_v3  ;;  %v721_v15 = vmax.f32 %v701_v9, 0.0 }
 0x1d6   : > { %v1128_v6 = vpop.f32.mrf.mxu1 }
 0x1d7   : > { %v704_v8 = vadd.f32 %v1128_v6, %v997_v27  ;;  %1153 = vmatprep.mubr.bf16.mxu1 %v727_v4  ;;  %v719_v13 = vmax.f32 %v693_v7, 0.0 }
 0x1d8   : > { %v695_v10 = vpop.f32.mrf.mxu1  ;;  %1154 = vmatmul.mubr.bf16.vlgmr.msra.gmra.mxu1 %v728_v5 }
 0x1d9   : > { %v696_v11 = vadd.f32 %v997_v27, %v695_v10  ;;  %v722_v12 = vmax.f32 %v704_v8, 0.0 }
 0x1db   : > { %v720_v14 = vmax.f32 %v696_v11, 0.0  ;;  %v730_v17 = vpack.c.bf16 %v722_v12, %v721_v15 }
 0x1dd   : > { %v729_v16 = vpack.c.bf16 %v720_v14, %v719_v13 }
 0x1df   : > { %1157 = vmatprep.mubr.bf16.mxu1 %v729_v16 }
 0x1e0   : > { %1158 = vmatmul.mubr.bf16.gmra.mxu1 %v730_v17 }
 0x288   : > { %v1147_v19 = vpop.f32.mrf.mxu0 }
 0x289   : > { %v845_v20 = vadd.f32 %v1147_v19, %v1006_v18 }
 0x28a   : > { %v836_v21 = vpop.f32.mrf.mxu0 }
 0x28b   : > { %901 = vst [vmem:[%s1380_s23 + $0x10] sm:$0xff] %v845_v20  ;;  %v837_v22 = vadd.f32 %v1006_v18, %v836_v21 }
 0x28c   : > { %v1148_v23 = vpop.f32.mrf.mxu0 }
 0x28d   : > { %899 = vst [vmem:[%s1380_s23] sm:$0xff] %v837_v22  ;;  %v848_v24 = vadd.f32 %v1148_v23, %v1006_v18 }
 0x28e   : > { %v839_v25 = vpop.f32.mrf.mxu0 }
 0x28f   : > { %902 = vst [vmem:[%s1380_s23 + $0x18] sm:$0xff] %v848_v24  ;;  %v840_v26 = vadd.f32 %v1006_v18, %v839_v25 }
 0x290   : > { %v1151_v27 = vpop.f32.mrf.mxu0 }
 0x291   : > { %900 = vst [vmem:[%s1380_s23 + $0x8] sm:$0xff] %v840_v26  ;;  %v861_v28 = vadd.f32 %v1151_v27, %v1006_v18 }
 0x292   : > { %v852_v29 = vpop.f32.mrf.mxu0 }
 0x293   : > { %905 = vst [vmem:[%s1380_s23 + $0x30] sm:$0xff] %v861_v28  ;;  %v853_v30 = vadd.f32 %v1006_v18, %v852_v29 }
 0x294   : > { %v1152_v31 = vpop.f32.mrf.mxu0 }
 0x295   : > { %903 = vst [vmem:[%s1380_s23 + $0x20] sm:$0xff] %v853_v30  ;;  %v864_v32 = vadd.f32 %v1152_v31, %v1006_v18 }
 0x296   : > { %v855_v33 = vpop.f32.mrf.mxu0 }
 0x297   : > { %906 = vst [vmem:[%s1380_s23 + $0x38] sm:$0xff] %v864_v32  ;;  %v856_v34 = vadd.f32 %v1006_v18, %v855_v33 }
 0x298   : > { %v1155_v35 = vpop.f32.mrf.mxu1 }
 0x299   : > { %904 = vst [vmem:[%s1380_s23 + $0x28] sm:$0xff] %v856_v34  ;;  %v877_v36 = vadd.f32 %v1155_v35, %v1006_v18 }
 0x29a   : > { %v868_v37 = vpop.f32.mrf.mxu1 }
 0x29b   : > { %909 = vst [vmem:[%s1380_s23 + $0x50] sm:$0xff] %v877_v36  ;;  %v869_v38 = vadd.f32 %v1006_v18, %v868_v37 }
 0x29c   : > { %v1156_v39 = vpop.f32.mrf.mxu1 }
 0x29d   : > { %907 = vst [vmem:[%s1380_s23 + $0x40] sm:$0xff] %v869_v38  ;;  %v880_v40 = vadd.f32 %v1156_v39, %v1006_v18 }
 0x29e   : > { %v871_v41 = vpop.f32.mrf.mxu1 }
 0x29f   : > { %910 = vst [vmem:[%s1380_s23 + $0x58] sm:$0xff] %v880_v40  ;;  %v872_v42 = vadd.f32 %v1006_v18, %v871_v41 }
 0x2a0   : > { %v1159_v43 = vpop.f32.mrf.mxu1 }
 0x2a1   : > { %908 = vst [vmem:[%s1380_s23 + $0x48] sm:$0xff] %v872_v42  ;;  %v893_v44 = vadd.f32 %v1159_v43, %v1006_v18 }
 0x2a2   : > { %v884_v45 = vpop.f32.mrf.mxu1 }
 0x2a3   : > { %913 = vst [vmem:[%s1380_s23 + $0x70] sm:$0xff] %v893_v44  ;;  %v885_v46 = vadd.f32 %v1006_v18, %v884_v45 }
 0x2a4   : > { %v1160_v47 = vpop.f32.mrf.mxu1 }
 0x2a5   : > { %911 = vst [vmem:[%s1380_s23 + $0x60] sm:$0xff] %v885_v46  ;;  %v896_v48 = vadd.f32 %v1160_v47, %v1006_v18 }
 0x2a6   : > { %v887_v49 = vpop.f32.mrf.mxu1 }
 0x2a7   : > { %914 = vst [vmem:[%s1380_s23 + $0x78] sm:$0xff] %v896_v48  ;;  %v888_v50 = vadd.f32 %v1006_v18, %v887_v49 }
 0x2a9   : > { %912 = vst [vmem:[%s1380_s23 + $0x68] sm:$0xff] %v888_v50 }
 0x2aa PF: > { %s17_s24 = sadd.s32 1, %s1223_s24  }
 0x2ab   : > { %p14_p4 = scmp.ge.s32.totalorder %s17_s24, 4  }
 0x2ad   :  { %16 = sbr.rel (!%p14_p4) target bundleno = 1 (0x1), region = 78 }

</bundles_post_ra>
